<compile_context>
chip_gen: v7x
topology: tpu7x:2x2x1
jax: 0.10.0
libtpu: 0.0.40
codegen_flags: <defaults>
</compile_context>

<pallas_src>
import functools
import math

import jax
import jax.numpy as jnp
from jax.experimental import pallas as pl
from jax.experimental.pallas import tpu as pltpu


def _round_up(x, m):
    return ((x + m - 1) // m) * m


def _vmem_capacity_bytes():
    """Physical VMEM per TensorCore (64 MiB on v7x, 128 MiB on v5e/v6e)."""
    try:
        return int(pltpu.get_tpu_info().vmem_capacity_bytes)
    except Exception:
        return 64 << 20   # conservative default (v7x)


def _encoder_kernel(x_ref, w_ref, b_ref, o_ref, *, normalize, eps, mm_dtype,
                    approx_recip):
    """out = l2norm(x @ w + b, dim=-1) for one (TM, K) row tile.

    w is already in the canonical (K, N) MXU layout and stays resident in VMEM
    across grid steps; x is cast to the matmul dtype on the VPU (hidden under
    the MXU) so the f32 activations are read from HBM only once.
    """
    x = x_ref[...].astype(mm_dtype)                    # (TM, K)
    w = w_ref[...]                                     # (K,  N) resident
    b = b_ref[...]                                     # (1,  N) f32
    feats = jnp.dot(x, w, preferred_element_type=jnp.float32) + b   # (TM, N) f32
    if normalize:
        sq_sum = jnp.sum(feats * feats, axis=-1, keepdims=True)     # (TM, 1)
        # exact torch semantics: 1/(sqrt(s)+eps); cheap (TM,1) reciprocal
        # (EUP when approx) + broadcast multiply instead of a full-tile divide.
        inv = pl.reciprocal(jnp.sqrt(sq_sum) + eps, approx=approx_recip)
        feats = feats * inv
    o_ref[...] = feats.astype(o_ref.dtype)


def encoder_image_precomp(images, weight, bias, *, no_imgnorm=False,
                          use_bf16_matmul=True, approx_recip=None, tm=None):
    """images: (B, S, img_dim); weight: (embed_size, img_dim) (torch layout);
    bias: (embed_size,).  Returns (B, S, embed_size) float32."""
    B, S, K = images.shape
    N = weight.shape[0]
    M = B * S
    if approx_recip is None:
        approx_recip = use_bf16_matmul     # keep the f32 path bit-tight

    x2d = images.reshape(M, K).astype(jnp.float32)   # activations stay f32 in HBM

    # Pad embed dim to a multiple of 128 for unmasked lane-dense stores.  Zero
    # weight/bias columns contribute 0 to the sum of squares -> norm unchanged;
    # padded columns are sliced off below.
    Np = _round_up(N, 128)
    mm_dtype = jnp.bfloat16 if use_bf16_matmul else jnp.float32
    elt = 2 if use_bf16_matmul else 4

    # One-time transpose to the canonical (K, N) MXU layout, fused with the
    # dtype cast (a single weight-sized copy, amortized over every row tile).
    w_t = weight.T                                     # (K, N)
    if Np != N:
        w_t = jnp.pad(w_t, ((0, 0), (0, Np - N)))
        bias = jnp.pad(bias, ((0, Np - N),))
    w_t = w_t.astype(mm_dtype)
    b2d = bias.reshape(1, Np).astype(jnp.float32)

    # Row tile: big (512, MXU-aligned) by default; for small M split into ~2
    # tiles so the single "parallel" axis can still feed both v7x TensorCores.
    # No jnp.pad over M: grid = cdiv(M, tm); Pallas masks the ragged last block.
    if tm is None:
        tm = 512
        if M <= tm:
            tm = pl.cdiv(M, 2)
    tm = max(8, min(_round_up(tm, 8), _round_up(M, 8)))
    grid = (pl.cdiv(M, tm),)

    kernel = functools.partial(
        _encoder_kernel, normalize=not no_imgnorm, eps=1e-8,
        mm_dtype=mm_dtype, approx_recip=approx_recip)

    cost = pl.CostEstimate(
        flops=2 * M * K * Np,
        transcendentals=0,
        bytes_accessed=4 * M * K + elt * K * Np + 4 * (M * Np + Np),
    )

    # double-buffered x/out tiles + single-buffered resident weight/bias + body
    # temporaries, with 2x headroom, clamped to 80% of this chip's VMEM.
    vmem_need = (2 * tm * K * 4            # x tiles (f32, double-buffered)
                 + 2 * tm * Np * 4         # out tiles (f32, double-buffered)
                 + K * Np * elt            # resident weight (single buffer)
                 + Np * 4                  # resident bias
                 + tm * K * elt            # in-kernel cast of x
                 + tm * Np * 4)            # f32 feats temporary
    vmem_limit = int(min(max(2 * vmem_need, 8 << 20),
                         (_vmem_capacity_bytes() * 4) // 5))

    # TODO(synk): optionally emit a bf16 output when downstream accepts it
    # (halves v5e vst pressure and HBM writeback); kept f32 to match torch.
    def _call(single_buffer_resident):
        resident_kw = ({"pipeline_mode": pl.Buffered(1)}
                       if single_buffer_resident else {})
        return pl.pallas_call(
            kernel,
            out_shape=jax.ShapeDtypeStruct((M, Np), jnp.float32),
            grid=grid,
            in_specs=[
                pl.BlockSpec((tm, K), lambda i: (i, 0)),                 # rows
                pl.BlockSpec((K, Np), lambda i: (0, 0), **resident_kw),  # weight
                pl.BlockSpec((1, Np), lambda i: (0, 0), **resident_kw),  # bias
            ],
            out_specs=pl.BlockSpec((tm, Np), lambda i: (i, 0)),
            compiler_params=pltpu.CompilerParams(
                dimension_semantics=("parallel",),       # megacore-shardable
                vmem_limit_bytes=vmem_limit,
            ),
            cost_estimate=cost,
        )(x2d, w_t, b2d)

    try:
        out = _call(True)    # constant-index weight/bias kept single-buffered
    except Exception:        # pipeline_mode not supported by this jax build
        out = _call(False)

    return out[:, :N].reshape(B, S, N)


def init_params(key, img_dim, embed_size):
    """Xavier-uniform init of fc.weight exactly as the torch module does;
    fc.bias is zeros."""
    r = math.sqrt(6.0) / math.sqrt(img_dim + embed_size)
    weight = jax.random.uniform(
        key, (embed_size, img_dim), dtype=jnp.float32, minval=-r, maxval=r)
    bias = jnp.zeros((embed_size,), dtype=jnp.float32)
    return weight, bias


def _l2norm_ref(x, eps=1e-8):
    norm = jnp.sqrt(jnp.sum(x * x, axis=-1, keepdims=True)) + eps
    return x / norm


if __name__ == "__main__":
    key = jax.random.PRNGKey(0)
    k_img, k_w, k_b = jax.random.split(key, 3)

    B, S, IMG_DIM, EMBED = 2, 8, 32, 128
    images = jax.random.normal(k_img, (B, S, IMG_DIM), dtype=jnp.float32)
    weight, _ = init_params(k_w, IMG_DIM, EMBED)
    # nonzero bias so the bias-add path is actually exercised
    bias = 0.1 * jax.random.normal(k_b, (EMBED,), dtype=jnp.float32)

    ref = _l2norm_ref(
        images.reshape(B * S, IMG_DIM) @ weight.T + bias).reshape(B, S, EMBED)

    # 1) default fast path: bf16 MXU inputs, f32 accumulate/norm, approx recip
    feats = jax.block_until_ready(encoder_image_precomp(images, weight, bias))
    assert feats.shape == (B, S, EMBED)
    assert jnp.allclose(feats, ref, atol=2e-2, rtol=2e-2)

    # 2) f32 path + exact reciprocal at tight tolerance; explicit tm=8 gives a
    #    multi-step grid with the resident weight reused across steps
    feats32 = jax.block_until_ready(
        encoder_image_precomp(images, weight, bias, use_bf16_matmul=False, tm=8))
    assert jnp.allclose(feats32, ref, atol=1e-5, rtol=1e-5)

    # 3) no_imgnorm path (plain fc) through the same kernel
    feats_nn = jax.block_until_ready(
        encoder_image_precomp(images, weight, bias, no_imgnorm=True,
                              use_bf16_matmul=False))
    ref_nn = (images.reshape(B * S, IMG_DIM) @ weight.T + bias).reshape(B, S, EMBED)
    assert jnp.allclose(feats_nn, ref_nn, atol=1e-5, rtol=1e-5)

    # 4) non-128-multiple embed size exercises N padding + column slicing
    EMBED2 = 96
    w2, _ = init_params(k_w, IMG_DIM, EMBED2)
    b2 = 0.1 * jax.random.normal(k_b, (EMBED2,), dtype=jnp.float32)
    ref2 = _l2norm_ref(
        images.reshape(B * S, IMG_DIM) @ w2.T + b2).reshape(B, S, EMBED2)
    feats2 = jax.block_until_ready(
        encoder_image_precomp(images, w2, b2, use_bf16_matmul=False))
    assert jnp.allclose(feats2, ref2, atol=1e-5, rtol=1e-5)

    # 5) ragged M (B*S=10 not a multiple of tm): no wrapper pad, masked last block
    B3, S3 = 2, 5
    images3 = jax.random.normal(k_img, (B3, S3, IMG_DIM), dtype=jnp.float32)
    ref3 = _l2norm_ref(
        images3.reshape(B3 * S3, IMG_DIM) @ weight.T + bias).reshape(B3, S3, EMBED)
    feats3 = jax.block_until_ready(
        encoder_image_precomp(images3, weight, bias, use_bf16_matmul=False))
    assert jnp.allclose(feats3, ref3, atol=1e-5, rtol=1e-5)

    print("KERNEL_OK")
</pallas_src>

<mosaic_0001>
module attributes {stable_mosaic.version = 11 : i64} {
  func.func @_encoder_kernel(%arg0: i32, %arg1: memref<8x32xf32, #tpu.memory_space<vmem>>, %arg2: memref<32x128xbf16, #tpu.memory_space<vmem>>, %arg3: memref<1x128xf32, #tpu.memory_space<vmem>>, %arg4: memref<8x128xf32, #tpu.memory_space<vmem>>) attributes {dimension_semantics = [#tpu.dimension_semantics<parallel>], iteration_bounds = array<i64: 2>, scalar_prefetch = 0 : i64, scratch_operands = 0 : i64, tpu.core_type = #tpu.core_type<tc>, window_params = [{transform_indices = @transform_0, window_bounds = array<i64: 8, 32>}, {pipeline_mode = #tpu.pipeline_mode<synchronous>, transform_indices = @transform_1, window_bounds = array<i64: 32, 128>}, {pipeline_mode = #tpu.pipeline_mode<synchronous>, transform_indices = @transform_2, window_bounds = array<i64: 1, 128>}, {transform_indices = @transform_3, window_bounds = array<i64: 8, 128>}]} {
    %c0 = arith.constant 0 : index
    %c0_0 = arith.constant 0 : index
    %0 = vector.load %arg1[%c0, %c0_0] : memref<8x32xf32, #tpu.memory_space<vmem>>, vector<8x32xf32>
    %1 = arith.truncf %0 : vector<8x32xf32> to vector<8x32xbf16>
    %c0_1 = arith.constant 0 : index
    %c0_2 = arith.constant 0 : index
    %2 = vector.load %arg2[%c0_1, %c0_2] : memref<32x128xbf16, #tpu.memory_space<vmem>>, vector<32x128xbf16>
    %c0_3 = arith.constant 0 : index
    %c0_4 = arith.constant 0 : index
    %3 = vector.load %arg3[%c0_3, %c0_4] : memref<1x128xf32, #tpu.memory_space<vmem>>, vector<1x128xf32>
    %cst = arith.constant dense<0.000000e+00> : vector<8x128xf32>
    %4 = tpu.matmul %1, %2, %cst {dimension_numbers = #tpu.dot_dimension_numbers<[1], [0], [0], [1], [0, 0, 1, 1], [], []>} : vector<8x32xbf16>, vector<32x128xbf16>, vector<8x128xf32> -> vector<8x128xf32>
    %5 = vector.broadcast %3 : vector<1x128xf32> to vector<8x128xf32>
    %6 = arith.addf %4, %5 : vector<8x128xf32>
    %7 = arith.mulf %6, %6 : vector<8x128xf32>
    %cst_5 = arith.constant dense<0.000000e+00> : vector<8xf32>
    %8 = vector.multi_reduction <add>, %7, %cst_5 [1] : vector<8x128xf32> to vector<8xf32>
    %9 = vector.shape_cast %8 : vector<8xf32> to vector<8x1xf32>
    %10 = math.sqrt %9 : vector<8x1xf32>
    %cst_6 = arith.constant 9.99999993E-9 : f32
    %11 = vector.broadcast %cst_6 : f32 to vector<8x1xf32>
    %12 = arith.addf %10, %11 : vector<8x1xf32>
    %13 = tpu.reciprocal %12 {approx = true} : vector<8x1xf32> -> vector<8x1xf32>
    %14 = vector.broadcast %13 : vector<8x1xf32> to vector<8x128xf32>
    %15 = arith.mulf %6, %14 : vector<8x128xf32>
    %c0_7 = arith.constant 0 : index
    %c0_8 = arith.constant 0 : index
    %16 = vector.load %arg4[%c0_7, %c0_8] : memref<8x128xf32, #tpu.memory_space<vmem>>, vector<8x128xf32>
    tpu.vector_store %arg4[%c0_7, %c0_8], %15 {strides = array<i32>} : memref<8x128xf32, #tpu.memory_space<vmem>>, vector<8x128xf32>,
    return
  }
  func.func @transform_0(%arg0: i32) -> (i32, i32) {
    %c0_i32 = arith.constant 0 : i32
    %c0_i32_0 = arith.constant 0 : i32
    return %arg0, %c0_i32 : i32, i32
  }
  func.func @transform_1(%arg0: i32) -> (i32, i32) {
    %c0_i32 = arith.constant 0 : i32
    %c0_i32_0 = arith.constant 0 : i32
    %c0_i32_1 = arith.constant 0 : i32
    return %c0_i32, %c0_i32_0 : i32, i32
  }
  func.func @transform_2(%arg0: i32) -> (i32, i32) {
    %c0_i32 = arith.constant 0 : i32
    %c0_i32_0 = arith.constant 0 : i32
    %c0_i32_1 = arith.constant 0 : i32
    return %c0_i32, %c0_i32_0 : i32, i32
  }
  func.func @transform_3(%arg0: i32) -> (i32, i32) {
    %c0_i32 = arith.constant 0 : i32
    %c0_i32_0 = arith.constant 0 : i32
    return %arg0, %c0_i32 : i32, i32
  }
}

module attributes {stable_mosaic.version = 11 : i64} {
  func.func @_encoder_kernel(%arg0: i32, %arg1: memref<8x32xf32, #tpu.memory_space<vmem>>, %arg2: memref<32x128xbf16, #tpu.memory_space<vmem>>, %arg3: memref<1x128xf32, #tpu.memory_space<vmem>>, %arg4: memref<8x128xf32, #tpu.memory_space<vmem>>) attributes {dimension_semantics = [#tpu.dimension_semantics<parallel>], iteration_bounds = array<i64: 2>, scalar_prefetch = 0 : i64, scratch_operands = 0 : i64, tpu.core_type = #tpu.core_type<tc>, window_params = [{transform_indices = @transform_0, window_bounds = array<i64: 8, 32>}, {pipeline_mode = #tpu.pipeline_mode<synchronous>, transform_indices = @transform_1, window_bounds = array<i64: 32, 128>}, {pipeline_mode = #tpu.pipeline_mode<synchronous>, transform_indices = @transform_2, window_bounds = array<i64: 1, 128>}, {transform_indices = @transform_3, window_bounds = array<i64: 8, 128>}]} {
    %c0 = arith.constant 0 : index
    %c0_0 = arith.constant 0 : index
    %0 = vector.load %arg1[%c0, %c0_0] : memref<8x32xf32, #tpu.memory_space<vmem>>, vector<8x32xf32>
    %1 = arith.truncf %0 : vector<8x32xf32> to vector<8x32xbf16>
    %c0_1 = arith.constant 0 : index
    %c0_2 = arith.constant 0 : index
    %2 = vector.load %arg2[%c0_1, %c0_2] : memref<32x128xbf16, #tpu.memory_space<vmem>>, vector<32x128xbf16>
    %c0_3 = arith.constant 0 : index
    %c0_4 = arith.constant 0 : index
    %3 = vector.load %arg3[%c0_3, %c0_4] : memref<1x128xf32, #tpu.memory_space<vmem>>, vector<1x128xf32>
    %cst = arith.constant dense<0.000000e+00> : vector<8x128xf32>
    %4 = tpu.matmul %1, %2, %cst {dimension_numbers = #tpu.dot_dimension_numbers<[1], [0], [0], [1], [0, 0, 1, 1], [], []>} : vector<8x32xbf16>, vector<32x128xbf16>, vector<8x128xf32> -> vector<8x128xf32>
    %5 = vector.broadcast %3 : vector<1x128xf32> to vector<8x128xf32>
    %6 = arith.addf %4, %5 : vector<8x128xf32>
    %7 = arith.mulf %6, %6 : vector<8x128xf32>
    %cst_5 = arith.constant dense<0.000000e+00> : vector<8xf32>
    %8 = vector.multi_reduction <add>, %7, %cst_5 [1] : vector<8x128xf32> to vector<8xf32>
    %9 = vector.shape_cast %8 : vector<8xf32> to vector<8x1xf32>
    %10 = math.sqrt %9 : vector<8x1xf32>
    %cst_6 = arith.constant 9.99999993E-9 : f32
    %11 = vector.broadcast %cst_6 : f32 to vector<8x1xf32>
    %12 = arith.addf %10, %11 : vector<8x1xf32>
    %13 = tpu.reciprocal %12 {approx = true} : vector<8x1xf32> -> vector<8x1xf32>
    %14 = vector.broadcast %13 : vector<8x1xf32> to vector<8x128xf32>
    %15 = arith.mulf %6, %14 : vector<8x128xf32>
    %c0_7 = arith.constant 0 : index
    %c0_8 = arith.constant 0 : index
    %16 = vector.load %arg4[%c0_7, %c0_8] : memref<8x128xf32, #tpu.memory_space<vmem>>, vector<8x128xf32>
    tpu.vector_store %arg4[%c0_7, %c0_8], %15 {strides = array<i32>} : memref<8x128xf32, #tpu.memory_space<vmem>>, vector<8x128xf32>,
    return
  }
  func.func @transform_0(%arg0: i32) -> (i32, i32) {
    %c0_i32 = arith.constant 0 : i32
    %c0_i32_0 = arith.constant 0 : i32
    return %arg0, %c0_i32 : i32, i32
  }
  func.func @transform_1(%arg0: i32) -> (i32, i32) {
    %c0_i32 = arith.constant 0 : i32
    %c0_i32_0 = arith.constant 0 : i32
    %c0_i32_1 = arith.constant 0 : i32
    return %c0_i32, %c0_i32_0 : i32, i32
  }
  func.func @transform_2(%arg0: i32) -> (i32, i32) {
    %c0_i32 = arith.constant 0 : i32
    %c0_i32_0 = arith.constant 0 : i32
    %c0_i32_1 = arith.constant 0 : i32
    return %c0_i32, %c0_i32_0 : i32, i32
  }
  func.func @transform_3(%arg0: i32) -> (i32, i32) {
    %c0_i32 = arith.constant 0 : i32
    %c0_i32_0 = arith.constant 0 : i32
    return %arg0, %c0_i32 : i32, i32
  }
}

</mosaic_0001>

<bundles_post_ra>
// kernel: tpu_custom_call.1
= control target key start
LH: loop header
LB: loop body
LE: loop exit
PB: predicated region body
PF: predicated region fallthrough
CT: control target
= control target key end

     0   :  { %8 = vsyncpa [#allocation3], 0  ;;  %s835_s0 = inlined_call_operand.hbm [shape: f32[16,32], index: 0, kind: input, shape index: {}]   ;;  %s836_s1 = inlined_call_operand.hbm [shape: bf16[32,128], index: 1, kind: input, shape index: {}]   ;;  %s837_s2 = inlined_call_operand.vmem [shape: f32[1,128], index: 2, kind: input, shape index: {}]   ;;  %s838_s3 = inlined_call_operand.hbm [shape: f32[16,128], index: 3, kind: output, shape index: {}]  }
   0x1   :  { %10 = vsyncpa [#allocation3 + $0x1], 0 }
   0x2   :  { %11 = vsyncpa [#allocation6], 0 }
   0x3   :  { %12 = vsyncpa [#allocation4], 0 }
   0x4   :  { %14 = vsyncpa [#allocation4 + $0x1], 0  ;;  %s632_s12 = smov 0   ;;  %s634_s13 = smov 0  }
   0x5   :  { %s636_s14 = smov 0   ;;  %s638_s15 = smov 0  }
   0x6 LB: > { %s653_s16 = sadd.s32 4294967295, %s603_s15   ;;  %s379_s17 = sadd.s32 4294967294, %s603_s15   ;;  %s603_s15 = sphi %s638_s15, %s858_s15   ;;  %s599_s14 = sphi %s636_s14, %s857_s14   ;;  %s595_s13 = sphi %s634_s13, %s856_s13   ;;  %s591_s12 = sphi %s632_s12, %s855_s12  }
   0x7   : > { %p40_p0 = scmp.ne.s32.totalorder %s595_s13, %s591_s12  ;;  %p839_p1 = scmp.eq.s32.totalorder %s653_s16, 0 }
   0x8   : > { %p112_p3 = scmp.eq.s32.totalorder %s379_s17, 1  ;;  %p380_p5 = scmp.ge.s32.totalorder %s603_s15, 1 }
   0x9   : > { %p662_p4 = por %p839_p1, %p40_p0  ;;  %p119_p7 = scmp.lt.s32.totalorder %s603_s15, 3 }
   0xa   : > { %p667_p6 = por %p112_p3, %p40_p0  ;;  %s605_s21 = smov [#allocation5]  }
   0xb   : > { %s842_s18 = scalar_select %p662_p4, 1, 0 }
   0xc   : > { %s843_s19 = scalar_select %p667_p6, 1, 0 }
   0xd   : > { %p672_p8 = pnand %p380_p5, %p119_p7  ;;  %s131_s22 = sshll.u32 %s605_s21, 4  ;;  %s676_s22 = int_to_ptr.vmem [resolvable:$true] %s131_s22 }
   0xe   : > { %s688_s24 = sadd.s32 1, %s603_s15   ;;  %s27_s25 = sadd.s32 1, %s599_s14 }
   0xf   : > { %s844_s20 = scalar_select %p672_p8, 1, 0 }
  0x10   : > { %p416_p9 = pneg %p672_p8  ;;  %s24_s26 = ssub.s32 %s603_s15, %s688_s24 }
  0x11   : > { %s475_s29 = scalar_lea.hbm %s836_s1, 256 }
  0x12   : > { %p683_p11 = pnand %p416_p9, %p839_p1  ;;  %p476_p12 = scmp.ne.s32.totalorder %s836_s1, %s475_s29 }
  0x13   : > { %p482_p5 = scmp.lt.u32.totalorder %s475_s29, %s836_s1 }
  0x14   : > { %p477_p13 = pneg %p683_p11 }
  0x16   : > { %p478_p0 = pnand %p477_p13, %p476_p12 }
  0x18   : > { %p479_p3 = pneg %p478_p0 }
  0x1a   : > { %p484_p7 = pnand %p482_p5, %p479_p3 }
  0x1c   : > { %487 = shalt.err (!%p484_p7)
}
  0x1d   : > { %s488_s7 = scalar_lea.vmem %s676_s22, 256  ;;  %p496_p2 = scmp.lt.s32.totalorder %s676_s22, %s676_s22 }
  0x1e   : > { %p489_p9 = scmp.ne.s32.totalorder %s676_s22, %s488_s7  ;;  %p497_p6 = scmp.lt.s32.totalorder %s488_s7, %s488_s7 }
  0x20   : > { %p491_p10 = pnand %p489_p9, %p477_p13  ;;  %p498_p4 = por %p497_p6, %p496_p2 }
  0x22   : > { %p492_p1 = pneg %p491_p10 }
  0x24   : > { %p499_p8 = pnand %p498_p4, %p492_p1 }
  0x26   : > { %502 = shalt.err (!%p499_p8)
}
  0x27   : > { %s606_s8 = smov 64   ;;  %s607_s9 = smov 4  }
  0x28   : > { %419 = dma.hbm_to_vmem [thread:$0]  (!%p683_p11), %s836_s1, 256, %s676_s22, [#allocation6], %s606_s8, %s606_s8, %s607_s9  }
  0x29   : > { %p25_p2 = scmp.eq.s32.totalorder %s24_s26, 0  ;;  %p34_p1 = scmp.ne.s32.totalorder %s599_s14, %s595_s13 }
  0x2a   : > { %p35_p4 = scmp.eq.s32.totalorder %s603_s15, 0  ;;  %p429_p6 = scmp.lt.s32.totalorder %s603_s15, 2 }
  0x2b   : > { %s719_s17 = scalar_select %p25_p2, %s599_s14, %s27_s25  }
  0x2c   : > { %p36_p8 = por %p35_p4, %p34_p1  ;;  %p846_p10 = scmp.eq.s32.totalorder %s653_s16, 1 }
  0x2d   : > { %s148_s27 = sand.u32 1, %s599_s14   ;;  %s384_s28 = sshll.u32 %s603_s15, 7 }
  0x2e   : > { %p723_p12 = por %p846_p10, %p34_p1  ;;  %s383_s29 = sshll.u32 %s148_s27, 3 }
  0x2f   : > { %s732_s4 = scalar_lea.hbm %s835_s0, %s384_s28  ;;  %s152_s22 = scalar_lea.vmem [#allocation2], %s383_s29 }
  0x30   : > { %s159_s25 = sshll.u32 %s152_s22, 4  ;;  %p734_p11 = pnand %p429_p6, %p36_p8  ;;  %s738_s25 = int_to_ptr.vmem [resolvable:$true] %s159_s25 }
  0x31   : > { %s149_s5 = scalar_lea.sflag [#allocation3], %s148_s27  ;;  %s503_s6 = scalar_lea.hbm %s732_s4, 128 }
  0x32   : > { %p504_p13 = scmp.ne.s32.totalorder %s732_s4, %s503_s6  ;;  %p505_p0 = pneg %p734_p11 }
  0x33   : > { %s508_s9 = scalar_lea.hbm %s835_s0, 256  ;;  %p509_p7 = scmp.lt.u32.totalorder %s732_s4, %s835_s0 }
  0x34   : > { %p506_p3 = pnand %p505_p0, %p504_p13  ;;  %p510_p9 = scmp.lt.u32.totalorder %s508_s9, %s503_s6 }
  0x35   : > { %p512_p1 = scmp.lt.u32.totalorder %s503_s6, %s732_s4 }
  0x36   : > { %p507_p5 = pneg %p506_p3  ;;  %p511_p2 = por %p510_p9, %p509_p7 }
  0x38   : > { %p513_p4 = por %p512_p1, %p511_p2 }
  0x3a   : > { %p514_p6 = pnand %p513_p4, %p507_p5 }
  0x3c   : > { %517 = shalt.err (!%p514_p6)
}
  0x3d   : > { %s518_s27 = scalar_lea.vmem %s738_s25, 128  ;;  %s608_s28 = smov [#allocation2]  }
  0x3e   : > { %p519_p8 = scmp.ne.s32.totalorder %s738_s25, %s518_s27  ;;  %s523_s29 = sshll.u32 %s608_s28, 4  ;;  %s524_s29 = int_to_ptr.vmem [resolvable:$false] %s523_s29 }
  0x3f   : > { %s525_s23 = scalar_lea.vmem %s524_s29, 256  ;;  %p526_p3 = scmp.lt.s32.totalorder %s738_s25, %s524_s29 }
  0x40   : > { %p521_p10 = pnand %p519_p8, %p505_p0  ;;  %p527_p7 = scmp.lt.s32.totalorder %s525_s23, %s518_s27 }
  0x42   : > { %p522_p13 = pneg %p521_p10  ;;  %p528_p9 = por %p527_p7, %p526_p3 }
  0x44   : > { %p529_p2 = pnand %p528_p9, %p522_p13 }
  0x46   : > { %532 = shalt.err (!%p529_p2)
}
  0x47   : > { %423 = dma.hbm_to_vmem [thread:$0]  (!%p734_p11), %s732_s4, 128, %s738_s25, %s149_s5  }
  0x48   : > { %p849_p5 = scmp.ne.s32.totalorder %s844_s20, 0 }
  0x49   : > { %s768_s30 = sand.u32 (!%p849_p5), 1, %s595_s13   ;;  %p850_p0 = scmp.ne.s32.totalorder (!%p849_p5), %s842_s18, 0 }
  0x4a   : > { %168 = sbr.rel (%p849_p5) target bundleno = 496 (0x1f0), region = 32  ;;  %s386_s22 = sshll.u32 (!%p849_p5), %s768_s30, 3 }
  0x4b   : > { %s171_s6 = scalar_lea.sflag (!%p849_p5), [#allocation3], %s768_s30  ;;  %s174_s7 = scalar_lea.vmem (!%p849_p5), [#allocation2], %s386_s22 }
  0x51   : > { %578 = dma.done.wait (%p850_p0), %s171_s6, 128  }
  0x52   : > { %580 = vsyncadd (%p850_p0), %s171_s6, 4294967168  ;;  %p851_p11 = scmp.eq.s32.totalorder %s653_s16, 0 }
  0x54   : > { %582 = dma.done.wait (%p851_p11), [#allocation6], 256   ;;  %p852_p1 = pmov %p851_p11 }
  0x55   : > { %v609_v0 = vmov 0.0   ;;  %vm610_vm0 = vmmov 0   ;;  %v469_v1 = vld [vmem:[#allocation5] sm:$0xff]   ;;  %v470_v2 = vld [vmem:[#allocation5 + $0x8] sm:$0xff]   ;;  %v202_v3 = vld [vmem:[%s174_s7] sm:$0xff]  ;;  %vm227_vm1 = vcmask 261120  }
  0x56   : > { %584 = vsyncadd (%p852_p1), [#allocation6], 4294967040  ;;  %400 = vmatprep.subr.bf16.mxu0 %v609_v0  ;;  %404 = vmatprep.mubr.msk.bf16.mxu0 %vm610_vm0, %v609_v0  ;;  %v203_v4 = vpack.c.bf16 %v202_v3, %v202_v3  ;;  %v389_v5 = vld [vmem:[%s837_s2] ss:$0 sm:$0xff]  ;;  %s394_s4 = sshll.u32 %s653_s16, 7  ;;  %s200_s25 = scalar_lea.vmem [#allocation7], %s386_s22 }
  0x57   : > { %401 = vmatpush3.bf16.msra.mxu0 %v469_v1  ;;  %s299_s26 = sshll.u32 %s200_s25, 4  ;;  %s791_s9 = scalar_lea.hbm %s838_s3, %s394_s4  ;;  %s793_s26 = int_to_ptr.vmem [resolvable:$true] %s299_s26 }
  0x58   : > { %402 = vmatprep.subr.bf16.mxu0 %v609_v0  ;;  %s286_s10 = scalar_lea.sflag [#allocation4], %s768_s30  ;;  %s533_s11 = scalar_lea.vmem %s793_s26, 128 }
  0x59   : > { %p534_p4 = scmp.ne.s32.totalorder %s793_s26, %s533_s11  ;;  %s611_s16 = smov [#allocation7]  }
  0x5a   : > { %s537_s27 = sshll.u32 %s611_s16, 4  ;;  %s538_s27 = int_to_ptr.vmem [resolvable:$false] %s537_s27 }
  0x5b   : > { %403 = vmatpush3.bf16.msra.mxu0 %v470_v2  ;;  %p535_p6 = pnand %p534_p4, %p723_p12  ;;  %s539_s28 = scalar_lea.vmem %s538_s27, 256 }
  0x5c   : > { %p540_p10 = scmp.lt.s32.totalorder %s793_s26, %s538_s27  ;;  %p541_p13 = scmp.lt.s32.totalorder %s539_s28, %s533_s11 }
  0x5d   : > { %p536_p8 = pneg %p535_p6 }
  0x5e   : > { %405 = vmatmul.mubr.msk.bf16.vlgmr.msra.gmra.mrb[0].mxu0 %vm227_vm1, %v203_v4  ;;  %p542_p3 = por %p541_p13, %p540_p10 }
  0x60   : > { %p543_p7 = pnand %p542_p3, %p536_p8 }
 0x131   : > { %v265_v6 = vpop.f32.mrb[0].mxu0 }
 0x132   : > { %v266_v7 = vadd.f32 %v389_v5, %v265_v6  ;;  %v406_v8 = vpop.f32.mrb[1].mxu0 }
 0x133   : > { %v268_v9 = vpop.f32.mrb[2].mxu0 }
 0x134   : > { %v407_v10 = vpop.f32.mrb[3].mxu0  ;;  %v271_v11 = vmul.f32 %v266_v7, %v266_v7 }
 0x136   : > { %272 = vadd.xlane.f32.xlu0 %v271_v11 }
 0x1c3   : > { %v273_v12 = vpop.xlane.xlu0 %272 }
 0x1c4   : > { %471 = vrsqrt.f32 %v273_v12  ;;  %vm276_vm2 = vcmp.eq.f32.partialorder %v273_v12, inf  ;;  %v279_v15 = vand.u32 2147483648, %v273_v12  ;;  %vm278_vm3 = vcmp.eq.f32.partialorder %v273_v12, 0.0 }
 0x1ce   : > { %v472_v13 = vpop.eup %471 }
 0x1cf   : > { %v275_v14 = vmul.f32 %v472_v13, %v273_v12 }
 0x1d1   : > { %v277_v16 = vsel %vm276_vm2, %v273_v12, %v275_v14 }
 0x1d2   : > { %v280_v17 = vsel %vm278_vm3, %v279_v15, %v277_v16 }
 0x1d3   : > { %v281_v18 = vadd.f32 1e-08, %v280_v17 }
 0x1d5   : > { %473 = vrcp.f32 %v281_v18 }
 0x1df   : > { %v474_v19 = vpop.eup %473 }
 0x1e0   : > { %v283_v20 = vmul.f32 %v474_v19, %v266_v7 }
 0x1e2   : > { %284 = vst [vmem:[%s200_s25] sm:$0xff] %v283_v20 }
 0x1e3   : > { %546 = shalt.err (!%p543_p7)
}
 0x1e4   : > { %s547_s29 = scalar_lea.hbm %s791_s9, 128  ;;  %s551_s22 = scalar_lea.hbm %s838_s3, 256 }
 0x1e5   : > { %p548_p9 = scmp.ne.s32.totalorder %s791_s9, %s547_s29  ;;  %p552_p0 = scmp.lt.u32.totalorder %s791_s9, %s838_s3 }
 0x1e6   : > { %p553_p11 = scmp.lt.u32.totalorder %s551_s22, %s547_s29  ;;  %p555_p4 = scmp.lt.u32.totalorder %s547_s29, %s791_s9 }
 0x1e7   : > { %p549_p2 = pnand %p548_p9, %p723_p12 }
 0x1e8   : > { %p554_p1 = por %p553_p11, %p552_p0 }
 0x1e9   : > { %p550_p5 = pneg %p549_p2 }
 0x1ea   : > { %p556_p6 = por %p555_p4, %p554_p1 }
 0x1ec   : > { %p557_p8 = pnand %p556_p6, %p550_p5 }
 0x1ee   : > { %560 = shalt.err (!%p557_p8)
}
 0x1ef   : > { %414 = dma.vmem_to_hbm [thread:$0]  (%p723_p12), %s793_s26, 128, %s791_s9, %s286_s10  }
 0x1f0 PF: > { %s311_s18 = sand.u32 1, %s591_s12   ;;  %p853_p10 = scmp.ne.s32.totalorder %s843_s19, 0 }
 0x1f1   : > { %p854_p13 = scmp.ge.s32.totalorder %s603_s15, 2  ;;  %s312_s20 = scalar_lea.sflag [#allocation4], %s311_s18 }
 0x1f3   : > { %p425_p3 = pnand %p854_p13, %p853_p10 }
 0x1f5   : > { %586 = dma.done.wait (!%p425_p3), %s312_s20, 128  }
 0x1f6   : > { %588 = vsyncadd (!%p425_p3), %s312_s20, 4294967168  ;;  %p17_p7 = scmp.ge.s32.totalorder %s688_s24, 4   ;;  %s855_s12 = smov %s595_s13 }
 0x1f7   : > { %s856_s13 = smov %s599_s14  ;;  %s857_s14 = smov %s719_s17 }
 0x1f8   : > { %s858_s15 = smov %s688_s24  ;;  %19 = sbr.rel (!%p17_p7) target bundleno = 6 (0x6), region = 81 }
 0x1ff   :  { %317 = vsyncpa [#allocation3], 1 }
 0x200   :  { %319 = vsyncpa [#allocation3 + $0x1], 1 }
 0x201   :  { %320 = vsyncpa [#allocation6], 1 }
 0x202   :  { %321 = vsyncpa [#allocation4], 1 }
 0x203   :  { %323 = vsyncpa [#allocation4 + $0x1], 1 }

// kernel: tpu_custom_call.1
= control target key start
LH: loop header
LB: loop body
LE: loop exit
PB: predicated region body
PF: predicated region fallthrough
CT: control target
= control target key end

     0   :  { %8 = vsyncpa [#allocation3], 0  ;;  %s835_s0 = inlined_call_operand.hbm [shape: f32[16,32], index: 0, kind: input, shape index: {}]   ;;  %s836_s1 = inlined_call_operand.hbm [shape: bf16[32,128], index: 1, kind: input, shape index: {}]   ;;  %s837_s2 = inlined_call_operand.vmem [shape: f32[1,128], index: 2, kind: input, shape index: {}]   ;;  %s838_s3 = inlined_call_operand.hbm [shape: f32[16,128], index: 3, kind: output, shape index: {}]  }
   0x1   :  { %10 = vsyncpa [#allocation3 + $0x1], 0 }
   0x2   :  { %11 = vsyncpa [#allocation6], 0 }
   0x3   :  { %12 = vsyncpa [#allocation4], 0 }
   0x4   :  { %14 = vsyncpa [#allocation4 + $0x1], 0  ;;  %s632_s12 = smov 0   ;;  %s634_s13 = smov 0  }
   0x5   :  { %s636_s14 = smov 0   ;;  %s638_s15 = smov 0  }
   0x6 LB: > { %s653_s16 = sadd.s32 4294967295, %s603_s15   ;;  %s379_s17 = sadd.s32 4294967294, %s603_s15   ;;  %s603_s15 = sphi %s638_s15, %s858_s15   ;;  %s599_s14 = sphi %s636_s14, %s857_s14   ;;  %s595_s13 = sphi %s634_s13, %s856_s13   ;;  %s591_s12 = sphi %s632_s12, %s855_s12  }
   0x7   : > { %p40_p0 = scmp.ne.s32.totalorder %s595_s13, %s591_s12  ;;  %p839_p1 = scmp.eq.s32.totalorder %s653_s16, 0 }
   0x8   : > { %p112_p3 = scmp.eq.s32.totalorder %s379_s17, 1  ;;  %p380_p5 = scmp.ge.s32.totalorder %s603_s15, 1 }
   0x9   : > { %p662_p4 = por %p839_p1, %p40_p0  ;;  %p119_p7 = scmp.lt.s32.totalorder %s603_s15, 3 }
   0xa   : > { %p667_p6 = por %p112_p3, %p40_p0  ;;  %s605_s21 = smov [#allocation5]  }
   0xb   : > { %s842_s18 = scalar_select %p662_p4, 1, 0 }
   0xc   : > { %s843_s19 = scalar_select %p667_p6, 1, 0 }
   0xd   : > { %p672_p8 = pnand %p380_p5, %p119_p7  ;;  %s131_s22 = sshll.u32 %s605_s21, 4  ;;  %s676_s22 = int_to_ptr.vmem [resolvable:$true] %s131_s22 }
   0xe   : > { %s688_s24 = sadd.s32 1, %s603_s15   ;;  %s27_s25 = sadd.s32 1, %s599_s14 }
   0xf   : > { %s844_s20 = scalar_select %p672_p8, 1, 0 }
  0x10   : > { %p416_p9 = pneg %p672_p8  ;;  %s24_s26 = ssub.s32 %s603_s15, %s688_s24 }
  0x11   : > { %s475_s29 = scalar_lea.hbm %s836_s1, 256 }
  0x12   : > { %p683_p11 = pnand %p416_p9, %p839_p1  ;;  %p476_p12 = scmp.ne.s32.totalorder %s836_s1, %s475_s29 }
  0x13   : > { %p482_p5 = scmp.lt.u32.totalorder %s475_s29, %s836_s1 }
  0x14   : > { %p477_p13 = pneg %p683_p11 }
  0x16   : > { %p478_p0 = pnand %p477_p13, %p476_p12 }
  0x18   : > { %p479_p3 = pneg %p478_p0 }
  0x1a   : > { %p484_p7 = pnand %p482_p5, %p479_p3 }
  0x1c   : > { %487 = shalt.err (!%p484_p7)
}
  0x1d   : > { %s488_s7 = scalar_lea.vmem %s676_s22, 256  ;;  %p496_p2 = scmp.lt.s32.totalorder %s676_s22, %s676_s22 }
  0x1e   : > { %p489_p9 = scmp.ne.s32.totalorder %s676_s22, %s488_s7  ;;  %p497_p6 = scmp.lt.s32.totalorder %s488_s7, %s488_s7 }
  0x20   : > { %p491_p10 = pnand %p489_p9, %p477_p13  ;;  %p498_p4 = por %p497_p6, %p496_p2 }
  0x22   : > { %p492_p1 = pneg %p491_p10 }
  0x24   : > { %p499_p8 = pnand %p498_p4, %p492_p1 }
  0x26   : > { %502 = shalt.err (!%p499_p8)
}
  0x27   : > { %s606_s8 = smov 64   ;;  %s607_s9 = smov 4  }
  0x28   : > { %419 = dma.hbm_to_vmem [thread:$0]  (!%p683_p11), %s836_s1, 256, %s676_s22, [#allocation6], %s606_s8, %s606_s8, %s607_s9  }
  0x29   : > { %p25_p2 = scmp.eq.s32.totalorder %s24_s26, 0  ;;  %p34_p1 = scmp.ne.s32.totalorder %s599_s14, %s595_s13 }
  0x2a   : > { %p35_p4 = scmp.eq.s32.totalorder %s603_s15, 0  ;;  %p429_p6 = scmp.lt.s32.totalorder %s603_s15, 2 }
  0x2b   : > { %s719_s17 = scalar_select %p25_p2, %s599_s14, %s27_s25  }
  0x2c   : > { %p36_p8 = por %p35_p4, %p34_p1  ;;  %p846_p10 = scmp.eq.s32.totalorder %s653_s16, 1 }
  0x2d   : > { %s148_s27 = sand.u32 1, %s599_s14   ;;  %s384_s28 = sshll.u32 %s603_s15, 7 }
  0x2e   : > { %p723_p12 = por %p846_p10, %p34_p1  ;;  %s383_s29 = sshll.u32 %s148_s27, 3 }
  0x2f   : > { %s732_s4 = scalar_lea.hbm %s835_s0, %s384_s28  ;;  %s152_s22 = scalar_lea.vmem [#allocation2], %s383_s29 }
  0x30   : > { %s159_s25 = sshll.u32 %s152_s22, 4  ;;  %p734_p11 = pnand %p429_p6, %p36_p8  ;;  %s738_s25 = int_to_ptr.vmem [resolvable:$true] %s159_s25 }
  0x31   : > { %s149_s5 = scalar_lea.sflag [#allocation3], %s148_s27  ;;  %s503_s6 = scalar_lea.hbm %s732_s4, 128 }
  0x32   : > { %p504_p13 = scmp.ne.s32.totalorder %s732_s4, %s503_s6  ;;  %p505_p0 = pneg %p734_p11 }
  0x33   : > { %s508_s9 = scalar_lea.hbm %s835_s0, 256  ;;  %p509_p7 = scmp.lt.u32.totalorder %s732_s4, %s835_s0 }
  0x34   : > { %p506_p3 = pnand %p505_p0, %p504_p13  ;;  %p510_p9 = scmp.lt.u32.totalorder %s508_s9, %s503_s6 }
  0x35   : > { %p512_p1 = scmp.lt.u32.totalorder %s503_s6, %s732_s4 }
  0x36   : > { %p507_p5 = pneg %p506_p3  ;;  %p511_p2 = por %p510_p9, %p509_p7 }
  0x38   : > { %p513_p4 = por %p512_p1, %p511_p2 }
  0x3a   : > { %p514_p6 = pnand %p513_p4, %p507_p5 }
  0x3c   : > { %517 = shalt.err (!%p514_p6)
}
  0x3d   : > { %s518_s27 = scalar_lea.vmem %s738_s25, 128  ;;  %s608_s28 = smov [#allocation2]  }
  0x3e   : > { %p519_p8 = scmp.ne.s32.totalorder %s738_s25, %s518_s27  ;;  %s523_s29 = sshll.u32 %s608_s28, 4  ;;  %s524_s29 = int_to_ptr.vmem [resolvable:$false] %s523_s29 }
  0x3f   : > { %s525_s23 = scalar_lea.vmem %s524_s29, 256  ;;  %p526_p3 = scmp.lt.s32.totalorder %s738_s25, %s524_s29 }
  0x40   : > { %p521_p10 = pnand %p519_p8, %p505_p0  ;;  %p527_p7 = scmp.lt.s32.totalorder %s525_s23, %s518_s27 }
  0x42   : > { %p522_p13 = pneg %p521_p10  ;;  %p528_p9 = por %p527_p7, %p526_p3 }
  0x44   : > { %p529_p2 = pnand %p528_p9, %p522_p13 }
  0x46   : > { %532 = shalt.err (!%p529_p2)
}
  0x47   : > { %423 = dma.hbm_to_vmem [thread:$0]  (!%p734_p11), %s732_s4, 128, %s738_s25, %s149_s5  }
  0x48   : > { %p849_p5 = scmp.ne.s32.totalorder %s844_s20, 0 }
  0x49   : > { %s768_s30 = sand.u32 (!%p849_p5), 1, %s595_s13   ;;  %p850_p0 = scmp.ne.s32.totalorder (!%p849_p5), %s842_s18, 0 }
  0x4a   : > { %168 = sbr.rel (%p849_p5) target bundleno = 496 (0x1f0), region = 32  ;;  %s386_s22 = sshll.u32 (!%p849_p5), %s768_s30, 3 }
  0x4b   : > { %s171_s6 = scalar_lea.sflag (!%p849_p5), [#allocation3], %s768_s30  ;;  %s174_s7 = scalar_lea.vmem (!%p849_p5), [#allocation2], %s386_s22 }
  0x51   : > { %578 = dma.done.wait (%p850_p0), %s171_s6, 128  }
  0x52   : > { %580 = vsyncadd (%p850_p0), %s171_s6, 4294967168  ;;  %p851_p11 = scmp.eq.s32.totalorder %s653_s16, 0 }
  0x54   : > { %582 = dma.done.wait (%p851_p11), [#allocation6], 256   ;;  %p852_p1 = pmov %p851_p11 }
  0x55   : > { %v609_v0 = vmov 0.0   ;;  %vm610_vm0 = vmmov 0   ;;  %v469_v1 = vld [vmem:[#allocation5] sm:$0xff]   ;;  %v470_v2 = vld [vmem:[#allocation5 + $0x8] sm:$0xff]   ;;  %v202_v3 = vld [vmem:[%s174_s7] sm:$0xff]  ;;  %vm227_vm1 = vcmask 261120  }
  0x56   : > { %584 = vsyncadd (%p852_p1), [#allocation6], 4294967040  ;;  %400 = vmatprep.subr.bf16.mxu0 %v609_v0  ;;  %404 = vmatprep.mubr.msk.bf16.mxu0 %vm610_vm0, %v609_v0  ;;  %v203_v4 = vpack.c.bf16 %v202_v3, %v202_v3  ;;  %v389_v5 = vld [vmem:[%s837_s2] ss:$0 sm:$0xff]  ;;  %s394_s4 = sshll.u32 %s653_s16, 7  ;;  %s200_s25 = scalar_lea.vmem [#allocation7], %s386_s22 }
  0x57   : > { %401 = vmatpush3.bf16.msra.mxu0 %v469_v1  ;;  %s299_s26 = sshll.u32 %s200_s25, 4  ;;  %s791_s9 = scalar_lea.hbm %s838_s3, %s394_s4  ;;  %s793_s26 = int_to_ptr.vmem [resolvable:$true] %s299_s26 }
  0x58   : > { %402 = vmatprep.subr.bf16.mxu0 %v609_v0  ;;  %s286_s10 = scalar_lea.sflag [#allocation4], %s768_s30  ;;  %s533_s11 = scalar_lea.vmem %s793_s26, 128 }
  0x59   : > { %p534_p4 = scmp.ne.s32.totalorder %s793_s26, %s533_s11  ;;  %s611_s16 = smov [#allocation7]  }
  0x5a   : > { %s537_s27 = sshll.u32 %s611_s16, 4  ;;  %s538_s27 = int_to_ptr.vmem [resolvable:$false] %s537_s27 }
  0x5b   : > { %403 = vmatpush3.bf16.msra.mxu0 %v470_v2  ;;  %p535_p6 = pnand %p534_p4, %p723_p12  ;;  %s539_s28 = scalar_lea.vmem %s538_s27, 256 }
  0x5c   : > { %p540_p10 = scmp.lt.s32.totalorder %s793_s26, %s538_s27  ;;  %p541_p13 = scmp.lt.s32.totalorder %s539_s28, %s533_s11 }
  0x5d   : > { %p536_p8 = pneg %p535_p6 }
  0x5e   : > { %405 = vmatmul.mubr.msk.bf16.vlgmr.msra.gmra.mrb[0].mxu0 %vm227_vm1, %v203_v4  ;;  %p542_p3 = por %p541_p13, %p540_p10 }
  0x60   : > { %p543_p7 = pnand %p542_p3, %p536_p8 }
 0x131   : > { %v265_v6 = vpop.f32.mrb[0].mxu0 }
 0x132   : > { %v266_v7 = vadd.f32 %v389_v5, %v265_v6  ;;  %v406_v8 = vpop.f32.mrb[1].mxu0 }
 0x133   : > { %v268_v9 = vpop.f32.mrb[2].mxu0 }
 0x134   : > { %v407_v10 = vpop.f32.mrb[3].mxu0  ;;  %v271_v11 = vmul.f32 %v266_v7, %v266_v7 }
 0x136   : > { %272 = vadd.xlane.f32.xlu0 %v271_v11 }
 0x1c3   : > { %v273_v12 = vpop.xlane.xlu0 %272 }
 0x1c4   : > { %471 = vrsqrt.f32 %v273_v12  ;;  %vm276_vm2 = vcmp.eq.f32.partialorder %v273_v12, inf  ;;  %v279_v15 = vand.u32 2147483648, %v273_v12  ;;  %vm278_vm3 = vcmp.eq.f32.partialorder %v273_v12, 0.0 }
 0x1ce   : > { %v472_v13 = vpop.eup %471 }
 0x1cf   : > { %v275_v14 = vmul.f32 %v472_v13, %v273_v12 }
 0x1d1   : > { %v277_v16 = vsel %vm276_vm2, %v273_v12, %v275_v14 }
 0x1d2   : > { %v280_v17 = vsel %vm278_vm3, %v279_v15, %v277_v16 }
 0x1d3   : > { %v281_v18 = vadd.f32 1e-08, %v280_v17 }
 0x1d5   : > { %473 = vrcp.f32 %v281_v18 }
 0x1df   : > { %v474_v19 = vpop.eup %473 }
 0x1e0   : > { %v283_v20 = vmul.f32 %v474_v19, %v266_v7 }
 0x1e2   : > { %284 = vst [vmem:[%s200_s25] sm:$0xff] %v283_v20 }
 0x1e3   : > { %546 = shalt.err (!%p543_p7)
}
 0x1e4   : > { %s547_s29 = scalar_lea.hbm %s791_s9, 128  ;;  %s551_s22 = scalar_lea.hbm %s838_s3, 256 }
 0x1e5   : > { %p548_p9 = scmp.ne.s32.totalorder %s791_s9, %s547_s29  ;;  %p552_p0 = scmp.lt.u32.totalorder %s791_s9, %s838_s3 }
 0x1e6   : > { %p553_p11 = scmp.lt.u32.totalorder %s551_s22, %s547_s29  ;;  %p555_p4 = scmp.lt.u32.totalorder %s547_s29, %s791_s9 }
 0x1e7   : > { %p549_p2 = pnand %p548_p9, %p723_p12 }
 0x1e8   : > { %p554_p1 = por %p553_p11, %p552_p0 }
 0x1e9   : > { %p550_p5 = pneg %p549_p2 }
 0x1ea   : > { %p556_p6 = por %p555_p4, %p554_p1 }
 0x1ec   : > { %p557_p8 = pnand %p556_p6, %p550_p5 }
 0x1ee   : > { %560 = shalt.err (!%p557_p8)
}
 0x1ef   : > { %414 = dma.vmem_to_hbm [thread:$0]  (%p723_p12), %s793_s26, 128, %s791_s9, %s286_s10  }
 0x1f0 PF: > { %s311_s18 = sand.u32 1, %s591_s12   ;;  %p853_p10 = scmp.ne.s32.totalorder %s843_s19, 0 }
 0x1f1   : > { %p854_p13 = scmp.ge.s32.totalorder %s603_s15, 2  ;;  %s312_s20 = scalar_lea.sflag [#allocation4], %s311_s18 }
 0x1f3   : > { %p425_p3 = pnand %p854_p13, %p853_p10 }
 0x1f5   : > { %586 = dma.done.wait (!%p425_p3), %s312_s20, 128  }
 0x1f6   : > { %588 = vsyncadd (!%p425_p3), %s312_s20, 4294967168  ;;  %p17_p7 = scmp.ge.s32.totalorder %s688_s24, 4   ;;  %s855_s12 = smov %s595_s13 }
 0x1f7   : > { %s856_s13 = smov %s599_s14  ;;  %s857_s14 = smov %s719_s17 }
 0x1f8   : > { %s858_s15 = smov %s688_s24  ;;  %19 = sbr.rel (!%p17_p7) target bundleno = 6 (0x6), region = 81 }
 0x1ff   :  { %317 = vsyncpa [#allocation3], 1 }
 0x200   :  { %319 = vsyncpa [#allocation3 + $0x1], 1 }
 0x201   :  { %320 = vsyncpa [#allocation6], 1 }
 0x202   :  { %321 = vsyncpa [#allocation4], 1 }
 0x203   :  { %323 = vsyncpa [#allocation4 + $0x1], 1 }

</bundles_post_ra>
